<compile_context>
chip_gen: v7x
topology: tpu7x:2x2x1
jax: 0.10.0
libtpu: 0.0.40
codegen_flags: <defaults>
</compile_context>

<pallas_src>
import jax
import jax.numpy as jnp
from jax import lax
from jax.experimental import pallas as pl
from jax.experimental.pallas import tpu as pltpu

EPS = 1e-6


# ----------------------------- helpers ---------------------------------------
def _gelu_tanh(x):
    # TODO(synk): PyTorch nn.GELU() is the exact erf form; the tanh
    # approximation differs by <~1e-3 but lowers robustly to the EUP on
    # v5e/v6e/v7x.
    c = 0.7978845608028654  # sqrt(2/pi)
    return 0.5 * x * (1.0 + jnp.tanh(c * (x + 0.044715 * (x * x * x))))


def _layer_norm(x, g, b):
    mu = jnp.mean(x, axis=-1, keepdims=True)
    xc = x - mu
    var = jnp.mean(xc * xc, axis=-1, keepdims=True)
    return xc * lax.rsqrt(var + EPS) * g + b


# ------------------------------- kernel ---------------------------------------
def make_block_kernel(N, C, num_heads):
    head_dim = C // num_heads
    scale = head_dim ** -0.5

    def kernel(x_ref, g1_ref, b1_ref, wq_ref, wk_ref, wv_ref, wp_ref, bp_ref,
               g2_ref, b2_ref, w1_ref, bf1_ref, w2_ref, bf2_ref, o_ref):
        f32, bf16 = jnp.float32, jnp.bfloat16

        x = x_ref[...].astype(f32)                       # (N, C): one batch element

        # ---- norm1 + QKV projections ----
        xn = _layer_norm(x, g1_ref[...], b1_ref[...]).astype(bf16)
        # NOTE: three (N,C)@(C,C) dots only because C=32 column slices of a
        # fused (N,3C) result cannot be 128-lane aligned at this toy width.
        # TODO(synk): at real C (multiple of 128) fuse into one (N,C)@(C,3C)
        # MXU contraction and slice q/k/v at 128-aligned columns in-kernel.
        q = jnp.dot(xn, wq_ref[...], preferred_element_type=f32).astype(bf16)
        k = jnp.dot(xn, wk_ref[...], preferred_element_type=f32).astype(bf16)
        v = jnp.dot(xn, wv_ref[...], preferred_element_type=f32).astype(bf16)

        wp = wp_ref[...]                                 # (C, C) bf16

        # ---- per-head attention; output accumulated in registers (no scratch) ----
        # Head-concat is folded into the output projection:
        #   proj(concat_h o_h) = sum_h o_h @ Wp[h*d:(h+1)*d, :]
        # TODO(synk): the head loop is a static 4-iteration unroll only because
        # head_dim=8 slices sit at non-128-aligned lane offsets; at real C put
        # heads on a grid axis (or lane-aligned batched layout) and use a single
        # (N,C)@(C,C) projection on the 128-aligned head concat so live ranges
        # stay bounded and K/V tiles can be pipelined.
        acc = jnp.zeros((N, C), f32)
        for h in range(num_heads):
            c0, c1 = h * head_dim, (h + 1) * head_dim
            qh, kh, vh = q[:, c0:c1], k[:, c0:c1], v[:, c0:c1]      # (N, d) bf16
            s = jnp.einsum('nd,md->nm', qh, kh,
                           preferred_element_type=f32) * scale      # (N, N) f32
            s = s - jnp.max(s, axis=-1, keepdims=True)
            e = jnp.exp(s)
            p = e * pl.reciprocal(jnp.sum(e, axis=-1, keepdims=True), approx=True)
            oh = jnp.dot(p.astype(bf16), vh, preferred_element_type=f32)    # (N, d)
            acc = acc + jnp.dot(oh.astype(bf16), wp[c0:c1, :],
                                preferred_element_type=f32)                 # (N, C)

        x1 = x + acc + bp_ref[...]                       # residual 1

        # ---- norm2 + MLP ----
        # TODO(synk): at real ViT sizes on v7x (64 MiB VMEM), tile the MLP
        # hidden dim (4C) over a reduction grid axis with a f32 accumulator
        # instead of shrinking the token tile.
        xn2 = _layer_norm(x1, g2_ref[...], b2_ref[...]).astype(bf16)
        hdn = jnp.dot(xn2, w1_ref[...], preferred_element_type=f32) + bf1_ref[...]
        hdn = _gelu_tanh(hdn).astype(bf16)
        y = jnp.dot(hdn, w2_ref[...], preferred_element_type=f32) + bf2_ref[...]

        # TODO(synk): C=32 (<128 lanes) -> masked partial stores at this toy
        # width; real ViT C>=128 makes this store lane-dense already.
        o_ref[...] = (x1 + y).astype(o_ref.dtype)        # residual 2

    return kernel


def block_forward(x, params, num_heads):
    g1, b1, wqkv, wp, bp, g2, b2, w1, bf1, w2, bf2 = params
    B, N, C = x.shape
    bf16 = jnp.bfloat16

    # trace-time weight prep: split qkv columns, cast big matmul weights to bf16
    # (halves DMA bytes / resident VMEM; f32 accumulation happens on the MXU).
    wq = wqkv[:, :C].astype(bf16)
    wk = wqkv[:, C:2 * C].astype(bf16)
    wv = wqkv[:, 2 * C:].astype(bf16)
    kernel_params = (g1, b1, wq, wk, wv, wp.astype(bf16), bp, g2, b2,
                     w1.astype(bf16), bf1, w2.astype(bf16), bf2)

    kernel = make_block_kernel(N, C, num_heads)

    # Weights/params: full-array resident blocks (constant index_map -> no
    # re-fetch across grid steps).
    # TODO(synk): at real ViT sizes on v7x mark weight BlockSpecs
    # pipeline_mode=pl.Buffered(1) and keep vmem_limit_bytes <= ~48 MiB so
    # resident weights leave room for double-buffered activation tiles; on
    # v5e/v6e (128 MiB) raise the limit and take bigger token tiles instead.
    def resident(a):
        nd = a.ndim
        return pl.BlockSpec(a.shape, lambda i, nd=nd: (0,) * nd)

    # Batch is a "parallel" grid axis: one (N, C) token tile per step, sharded
    # across both v7x TensorCores (plain sequential loop on v5e/v6e).
    # TODO(synk): at real shapes also tile tokens on a parallel axis with
    # 256-multiple tiles for v6e/v7x (128-multiples on v5e).
    out = pl.pallas_call(
        kernel,
        out_shape=jax.ShapeDtypeStruct((B, N, C), x.dtype),
        grid=(B,),
        in_specs=[pl.BlockSpec((None, N, C), lambda b: (b, 0, 0))]
                 + [resident(p) for p in kernel_params],
        out_specs=pl.BlockSpec((None, N, C), lambda b: (b, 0, 0)),
        compiler_params=pltpu.CompilerParams(
            dimension_semantics=("parallel",),
            vmem_limit_bytes=32 * 1024 * 1024),
    )(x, *kernel_params)
    return out


# --------------------------- pure-JAX reference -------------------------------
# Mirrors the kernel's bf16-operand / f32-accumulation numerics.
def block_reference(x, params, num_heads):
    g1, b1, wqkv, wp, bp, g2, b2, w1, bf1, w2, bf2 = params
    B, N, C = x.shape
    d = C // num_heads
    scale = d ** -0.5
    f32, bf16 = jnp.float32, jnp.bfloat16
    M = B * N

    x2 = x.reshape(M, C).astype(f32)
    wq = wqkv[:, :C].astype(bf16)
    wk = wqkv[:, C:2 * C].astype(bf16)
    wv = wqkv[:, 2 * C:].astype(bf16)

    xn = _layer_norm(x2, g1, b1).astype(bf16)
    q = jnp.dot(xn, wq, preferred_element_type=f32)
    k = jnp.dot(xn, wk, preferred_element_type=f32)
    v = jnp.dot(xn, wv, preferred_element_type=f32)

    def heads(t):
        return t.reshape(B, N, num_heads, d).transpose(0, 2, 1, 3).astype(bf16)

    qh, kh, vh = heads(q), heads(k), heads(v)
    sco = jnp.einsum('bhnd,bhmd->bhnm', qh, kh,
                     preferred_element_type=f32) * scale
    p = jax.nn.softmax(sco, axis=-1)
    o = jnp.einsum('bhnm,bhmd->bhnd', p.astype(bf16), vh,
                   preferred_element_type=f32)
    o = o.transpose(0, 2, 1, 3).reshape(M, C)
    attn = jnp.dot(o.astype(bf16), wp.astype(bf16),
                   preferred_element_type=f32) + bp
    x1 = x2 + attn

    xn2 = _layer_norm(x1, g2, b2).astype(bf16)
    hdn = jnp.dot(xn2, w1.astype(bf16), preferred_element_type=f32) + bf1
    hdn = _gelu_tanh(hdn).astype(bf16)
    y = jnp.dot(hdn, w2.astype(bf16), preferred_element_type=f32) + bf2
    return (x1 + y).reshape(B, N, C)


# ----------------------------------- main -------------------------------------
if __name__ == "__main__":
    B, N, C = 2, 8, 32
    num_heads = 4
    mlp_ratio = 4.0
    H_mlp = int(C * mlp_ratio)

    key = jax.random.PRNGKey(0)
    keys = jax.random.split(key, 12)
    s = 0.05
    g1 = 1.0 + s * jax.random.normal(keys[0], (1, C), jnp.float32)
    b1 = s * jax.random.normal(keys[1], (1, C), jnp.float32)
    wqkv = s * jax.random.normal(keys[2], (C, 3 * C), jnp.float32)  # qkv_bias=False
    wp = s * jax.random.normal(keys[3], (C, C), jnp.float32)
    bp = s * jax.random.normal(keys[4], (1, C), jnp.float32)
    g2 = 1.0 + s * jax.random.normal(keys[5], (1, C), jnp.float32)
    b2 = s * jax.random.normal(keys[6], (1, C), jnp.float32)
    w1 = s * jax.random.normal(keys[7], (C, H_mlp), jnp.float32)
    bf1 = s * jax.random.normal(keys[8], (1, H_mlp), jnp.float32)
    w2 = s * jax.random.normal(keys[9], (H_mlp, C), jnp.float32)
    bf2 = s * jax.random.normal(keys[10], (1, C), jnp.float32)
    params = (g1, b1, wqkv, wp, bp, g2, b2, w1, bf1, w2, bf2)

    x = jax.random.normal(keys[11], (B, N, C), jnp.float32)

    out = block_forward(x, params, num_heads)
    jax.block_until_ready(out)

    ref = block_reference(x, params, num_heads)
    err = float(jnp.max(jnp.abs(out - ref)))
    assert jnp.allclose(out, ref, atol=2e-2, rtol=2e-2), f"max abs err {err}"

    print("KERNEL_OK")
</pallas_src>

<mosaic_0001>
module attributes {stable_mosaic.version = 11 : i64} {
  func.func @kernel(%arg0: i32, %arg1: memref<1x8x32xf32, #tpu.memory_space<vmem>>, %arg2: memref<1x32xf32, #tpu.memory_space<vmem>>, %arg3: memref<1x32xf32, #tpu.memory_space<vmem>>, %arg4: memref<32x32xbf16, #tpu.memory_space<vmem>>, %arg5: memref<32x32xbf16, #tpu.memory_space<vmem>>, %arg6: memref<32x32xbf16, #tpu.memory_space<vmem>>, %arg7: memref<32x32xbf16, #tpu.memory_space<vmem>>, %arg8: memref<1x32xf32, #tpu.memory_space<vmem>>, %arg9: memref<1x32xf32, #tpu.memory_space<vmem>>, %arg10: memref<1x32xf32, #tpu.memory_space<vmem>>, %arg11: memref<32x128xbf16, #tpu.memory_space<vmem>>, %arg12: memref<1x128xf32, #tpu.memory_space<vmem>>, %arg13: memref<128x32xbf16, #tpu.memory_space<vmem>>, %arg14: memref<1x32xf32, #tpu.memory_space<vmem>>, %arg15: memref<1x8x32xf32, #tpu.memory_space<vmem>>) attributes {dimension_semantics = [#tpu.dimension_semantics<parallel>], iteration_bounds = array<i64: 2>, scalar_prefetch = 0 : i64, scratch_operands = 0 : i64, tpu.core_type = #tpu.core_type<tc>, window_params = [{transform_indices = @transform_0, window_bounds = array<i64: 1, 8, 32>}, {pipeline_mode = #tpu.pipeline_mode<synchronous>, transform_indices = @transform_1, window_bounds = array<i64: 1, 32>}, {pipeline_mode = #tpu.pipeline_mode<synchronous>, transform_indices = @transform_2, window_bounds = array<i64: 1, 32>}, {pipeline_mode = #tpu.pipeline_mode<synchronous>, transform_indices = @transform_3, window_bounds = array<i64: 32, 32>}, {pipeline_mode = #tpu.pipeline_mode<synchronous>, transform_indices = @transform_4, window_bounds = array<i64: 32, 32>}, {pipeline_mode = #tpu.pipeline_mode<synchronous>, transform_indices = @transform_5, window_bounds = array<i64: 32, 32>}, {pipeline_mode = #tpu.pipeline_mode<synchronous>, transform_indices = @transform_6, window_bounds = array<i64: 32, 32>}, {pipeline_mode = #tpu.pipeline_mode<synchronous>, transform_indices = @transform_7, window_bounds = array<i64: 1, 32>}, {pipeline_mode = #tpu.pipeline_mode<synchronous>, transform_indices = @transform_8, window_bounds = array<i64: 1, 32>}, {pipeline_mode = #tpu.pipeline_mode<synchronous>, transform_indices = @transform_9, window_bounds = array<i64: 1, 32>}, {pipeline_mode = #tpu.pipeline_mode<synchronous>, transform_indices = @transform_10, window_bounds = array<i64: 32, 128>}, {pipeline_mode = #tpu.pipeline_mode<synchronous>, transform_indices = @transform_11, window_bounds = array<i64: 1, 128>}, {pipeline_mode = #tpu.pipeline_mode<synchronous>, transform_indices = @transform_12, window_bounds = array<i64: 128, 32>}, {pipeline_mode = #tpu.pipeline_mode<synchronous>, transform_indices = @transform_13, window_bounds = array<i64: 1, 32>}, {transform_indices = @transform_14, window_bounds = array<i64: 1, 8, 32>}]} {
    %c0 = arith.constant 0 : index
    %c0_0 = arith.constant 0 : index
    %c0_1 = arith.constant 0 : index
    %0 = vector.load %arg1[%c0, %c0_0, %c0_1] : memref<1x8x32xf32, #tpu.memory_space<vmem>>, vector<1x8x32xf32>
    %1 = vector.shape_cast %0 : vector<1x8x32xf32> to vector<8x32xf32>
    %c0_2 = arith.constant 0 : index
    %c0_3 = arith.constant 0 : index
    %2 = vector.load %arg2[%c0_2, %c0_3] : memref<1x32xf32, #tpu.memory_space<vmem>>, vector<1x32xf32>
    %c0_4 = arith.constant 0 : index
    %c0_5 = arith.constant 0 : index
    %3 = vector.load %arg3[%c0_4, %c0_5] : memref<1x32xf32, #tpu.memory_space<vmem>>, vector<1x32xf32>
    %cst = arith.constant dense<0.000000e+00> : vector<8xf32>
    %4 = vector.multi_reduction <add>, %1, %cst [1] : vector<8x32xf32> to vector<8xf32>
    %5 = vector.shape_cast %4 : vector<8xf32> to vector<8x1xf32>
    %cst_6 = arith.constant 3.200000e+01 : f32
    %6 = vector.broadcast %cst_6 : f32 to vector<8x1xf32>
    %7 = arith.divf %5, %6 : vector<8x1xf32>
    %8 = vector.broadcast %7 : vector<8x1xf32> to vector<8x32xf32>
    %9 = arith.subf %1, %8 : vector<8x32xf32>
    %10 = arith.mulf %9, %9 : vector<8x32xf32>
    %cst_7 = arith.constant dense<0.000000e+00> : vector<8xf32>
    %11 = vector.multi_reduction <add>, %10, %cst_7 [1] : vector<8x32xf32> to vector<8xf32>
    %12 = vector.shape_cast %11 : vector<8xf32> to vector<8x1xf32>
    %cst_8 = arith.constant 3.200000e+01 : f32
    %13 = vector.broadcast %cst_8 : f32 to vector<8x1xf32>
    %14 = arith.divf %12, %13 : vector<8x1xf32>
    %cst_9 = arith.constant 9.99999997E-7 : f32
    %15 = vector.broadcast %cst_9 : f32 to vector<8x1xf32>
    %16 = arith.addf %14, %15 : vector<8x1xf32>
    %17 = math.rsqrt %16 : vector<8x1xf32>
    %18 = vector.broadcast %17 : vector<8x1xf32> to vector<8x32xf32>
    %19 = arith.mulf %9, %18 : vector<8x32xf32>
    %20 = vector.broadcast %2 : vector<1x32xf32> to vector<8x32xf32>
    %21 = arith.mulf %19, %20 : vector<8x32xf32>
    %22 = vector.broadcast %3 : vector<1x32xf32> to vector<8x32xf32>
    %23 = arith.addf %21, %22 : vector<8x32xf32>
    %24 = arith.truncf %23 : vector<8x32xf32> to vector<8x32xbf16>
    %c0_10 = arith.constant 0 : index
    %c0_11 = arith.constant 0 : index
    %25 = vector.load %arg4[%c0_10, %c0_11] : memref<32x32xbf16, #tpu.memory_space<vmem>>, vector<32x32xbf16>
    %cst_12 = arith.constant dense<0.000000e+00> : vector<8x32xf32>
    %26 = tpu.matmul %24, %25, %cst_12 {dimension_numbers = #tpu.dot_dimension_numbers<[1], [0], [0], [1], [0, 0, 1, 1], [], []>} : vector<8x32xbf16>, vector<32x32xbf16>, vector<8x32xf32> -> vector<8x32xf32>
    %27 = arith.truncf %26 : vector<8x32xf32> to vector<8x32xbf16>
    %c0_13 = arith.constant 0 : index
    %c0_14 = arith.constant 0 : index
    %28 = vector.load %arg5[%c0_13, %c0_14] : memref<32x32xbf16, #tpu.memory_space<vmem>>, vector<32x32xbf16>
    %cst_15 = arith.constant dense<0.000000e+00> : vector<8x32xf32>
    %29 = tpu.matmul %24, %28, %cst_15 {dimension_numbers = #tpu.dot_dimension_numbers<[1], [0], [0], [1], [0, 0, 1, 1], [], []>} : vector<8x32xbf16>, vector<32x32xbf16>, vector<8x32xf32> -> vector<8x32xf32>
    %30 = arith.truncf %29 : vector<8x32xf32> to vector<8x32xbf16>
    %c0_16 = arith.constant 0 : index
    %c0_17 = arith.constant 0 : index
    %31 = vector.load %arg6[%c0_16, %c0_17] : memref<32x32xbf16, #tpu.memory_space<vmem>>, vector<32x32xbf16>
    %cst_18 = arith.constant dense<0.000000e+00> : vector<8x32xf32>
    %32 = tpu.matmul %24, %31, %cst_18 {dimension_numbers = #tpu.dot_dimension_numbers<[1], [0], [0], [1], [0, 0, 1, 1], [], []>} : vector<8x32xbf16>, vector<32x32xbf16>, vector<8x32xf32> -> vector<8x32xf32>
    %33 = arith.truncf %32 : vector<8x32xf32> to vector<8x32xbf16>
    %c0_19 = arith.constant 0 : index
    %c0_20 = arith.constant 0 : index
    %34 = vector.load %arg7[%c0_19, %c0_20] : memref<32x32xbf16, #tpu.memory_space<vmem>>, vector<32x32xbf16>
    %cst_21 = arith.constant 0.000000e+00 : f32
    %35 = vector.broadcast %cst_21 : f32 to vector<8x32xf32>
    %36 = vector.extract_strided_slice %27 {offsets = [0, 0], sizes = [8, 8], strides = [1, 1]} : vector<8x32xbf16> to vector<8x8xbf16>
    %37 = vector.extract_strided_slice %30 {offsets = [0, 0], sizes = [8, 8], strides = [1, 1]} : vector<8x32xbf16> to vector<8x8xbf16>
    %38 = vector.extract_strided_slice %33 {offsets = [0, 0], sizes = [8, 8], strides = [1, 1]} : vector<8x32xbf16> to vector<8x8xbf16>
    "tpu.trace_start"() <{level = 10 : i32, message = "nd,md->nm"}> : () -> ()
    %cst_22 = arith.constant dense<0.000000e+00> : vector<8x8xf32>
    %39 = tpu.matmul %36, %37, %cst_22 {dimension_numbers = #tpu.dot_dimension_numbers<[1], [1], [0], [0], [0, 0, 1, 0], [], []>} : vector<8x8xbf16>, vector<8x8xbf16>, vector<8x8xf32> -> vector<8x8xf32>
    "tpu.trace_stop"() : () -> ()
    %cst_23 = arith.constant 0.353553385 : f32
    %40 = vector.broadcast %cst_23 : f32 to vector<8x8xf32>
    %41 = arith.mulf %39, %40 : vector<8x8xf32>
    %cst_24 = arith.constant dense<0xFF800000> : vector<8xf32>
    %42 = vector.multi_reduction <maximumf>, %41, %cst_24 [1] : vector<8x8xf32> to vector<8xf32>
    %43 = vector.shape_cast %42 : vector<8xf32> to vector<8x1xf32>
    %44 = vector.broadcast %43 : vector<8x1xf32> to vector<8x8xf32>
    %45 = arith.subf %41, %44 : vector<8x8xf32>
    %46 = math.exp %45 : vector<8x8xf32>
    %cst_25 = arith.constant dense<0.000000e+00> : vector<8xf32>
    %47 = vector.multi_reduction <add>, %46, %cst_25 [1] : vector<8x8xf32> to vector<8xf32>
    %48 = vector.shape_cast %47 : vector<8xf32> to vector<8x1xf32>
    %49 = tpu.reciprocal %48 {approx = true} : vector<8x1xf32> -> vector<8x1xf32>
    %50 = vector.broadcast %49 : vector<8x1xf32> to vector<8x8xf32>
    %51 = arith.mulf %46, %50 : vector<8x8xf32>
    %52 = arith.truncf %51 : vector<8x8xf32> to vector<8x8xbf16>
    %cst_26 = arith.constant dense<0.000000e+00> : vector<8x8xf32>
    %53 = tpu.matmul %52, %38, %cst_26 {dimension_numbers = #tpu.dot_dimension_numbers<[1], [0], [0], [1], [0, 0, 1, 1], [], []>} : vector<8x8xbf16>, vector<8x8xbf16>, vector<8x8xf32> -> vector<8x8xf32>
    %54 = arith.truncf %53 : vector<8x8xf32> to vector<8x8xbf16>
    %55 = vector.extract_strided_slice %34 {offsets = [0, 0], sizes = [8, 32], strides = [1, 1]} : vector<32x32xbf16> to vector<8x32xbf16>
    %cst_27 = arith.constant dense<0.000000e+00> : vector<8x32xf32>
    %56 = tpu.matmul %54, %55, %cst_27 {dimension_numbers = #tpu.dot_dimension_numbers<[1], [0], [0], [1], [0, 0, 1, 1], [], []>} : vector<8x8xbf16>, vector<8x32xbf16>, vector<8x32xf32> -> vector<8x32xf32>
    %57 = arith.addf %35, %56 : vector<8x32xf32>
    %58 = vector.extract_strided_slice %27 {offsets = [0, 8], sizes = [8, 8], strides = [1, 1]} : vector<8x32xbf16> to vector<8x8xbf16>
    %59 = vector.extract_strided_slice %30 {offsets = [0, 8], sizes = [8, 8], strides = [1, 1]} : vector<8x32xbf16> to vector<8x8xbf16>
    %60 = vector.extract_strided_slice %33 {offsets = [0, 8], sizes = [8, 8], strides = [1, 1]} : vector<8x32xbf16> to vector<8x8xbf16>
    "tpu.trace_start"() <{level = 10 : i32, message = "nd,md->nm"}> : () -> ()
    %cst_28 = arith.constant dense<0.000000e+00> : vector<8x8xf32>
    %61 = tpu.matmul %58, %59, %cst_28 {dimension_numbers = #tpu.dot_dimension_numbers<[1], [1], [0], [0], [0, 0, 1, 0], [], []>} : vector<8x8xbf16>, vector<8x8xbf16>, vector<8x8xf32> -> vector<8x8xf32>
    "tpu.trace_stop"() : () -> ()
    %cst_29 = arith.constant 0.353553385 : f32
    %62 = vector.broadcast %cst_29 : f32 to vector<8x8xf32>
    %63 = arith.mulf %61, %62 : vector<8x8xf32>
    %cst_30 = arith.constant dense<0xFF800000> : vector<8xf32>
    %64 = vector.multi_reduction <maximumf>, %63, %cst_30 [1] : vector<8x8xf32> to vector<8xf32>
    %65 = vector.shape_cast %64 : vector<8xf32> to vector<8x1xf32>
    %66 = vector.broadcast %65 : vector<8x1xf32> to vector<8x8xf32>
    %67 = arith.subf %63, %66 : vector<8x8xf32>
    %68 = math.exp %67 : vector<8x8xf32>
    %cst_31 = arith.constant dense<0.000000e+00> : vector<8xf32>
    %69 = vector.multi_reduction <add>, %68, %cst_31 [1] : vector<8x8xf32> to vector<8xf32>
    %70 = vector.shape_cast %69 : vector<8xf32> to vector<8x1xf32>
    %71 = tpu.reciprocal %70 {approx = true} : vector<8x1xf32> -> vector<8x1xf32>
    %72 = vector.broadcast %71 : vector<8x1xf32> to vector<8x8xf32>
    %73 = arith.mulf %68, %72 : vector<8x8xf32>
    %74 = arith.truncf %73 : vector<8x8xf32> to vector<8x8xbf16>
    %cst_32 = arith.constant dense<0.000000e+00> : vector<8x8xf32>
    %75 = tpu.matmul %74, %60, %cst_32 {dimension_numbers = #tpu.dot_dimension_numbers<[1], [0], [0], [1], [0, 0, 1, 1], [], []>} : vector<8x8xbf16>, vector<8x8xbf16>, vector<8x8xf32> -> vector<8x8xf32>
    %76 = arith.truncf %75 : vector<8x8xf32> to vector<8x8xbf16>
    %77 = vector.extract_strided_slice %34 {offsets = [8, 0], sizes = [8, 32], strides = [1, 1]} : vector<32x32xbf16> to vector<8x32xbf16>
    %cst_33 = arith.constant dense<0.000000e+00> : vector<8x32xf32>
    %78 = tpu.matmul %76, %77, %cst_33 {dimension_numbers = #tpu.dot_dimension_numbers<[1], [0], [0], [1], [0, 0, 1, 1], [], []>} : vector<8x8xbf16>, vector<8x32xbf16>, vector<8x32xf32> -> vector<8x32xf32>
    %79 = arith.addf %57, %78 : vector<8x32xf32>
    %80 = vector.extract_strided_slice %27 {offsets = [0, 16], sizes = [8, 8], strides = [1, 1]} : vector<8x32xbf16> to vector<8x8xbf16>
    %81 = vector.extract_strided_slice %30 {offsets = [0, 16], sizes = [8, 8], strides = [1, 1]} : vector<8x32xbf16> to vector<8x8xbf16>
    %82 = vector.extract_strided_slice %33 {offsets = [0, 16], sizes = [8, 8], strides = [1, 1]} : vector<8x32xbf16> to vector<8x8xbf16>
    "tpu.trace_start"() <{level = 10 : i32, message = "nd,md->nm"}> : () -> ()
    %cst_34 = arith.constant dense<0.000000e+00> : vector<8x8xf32>
    %83 = tpu.matmul %80, %81, %cst_34 {dimension_numbers = #tpu.dot_dimension_numbers<[1], [1], [0], [0], [0, 0, 1, 0], [], []>} : vector<8x8xbf16>, vector<8x8xbf16>, vector<8x8xf32> -> vector<8x8xf32>
    "tpu.trace_stop"() : () -> ()
    %cst_35 = arith.constant 0.353553385 : f32
    %84 = vector.broadcast %cst_35 : f32 to vector<8x8xf32>
    %85 = arith.mulf %83, %84 : vector<8x8xf32>
    %cst_36 = arith.constant dense<0xFF800000> : vector<8xf32>
    %86 = vector.multi_reduction <maximumf>, %85, %cst_36 [1] : vector<8x8xf32> to vector<8xf32>
    %87 = vector.shape_cast %86 : vector<8xf32> to vector<8x1xf32>
    %88 = vector.broadcast %87 : vector<8x1xf32> to vector<8x8xf32>
    %89 = arith.subf %85, %88 : vector<8x8xf32>
    %90 = math.exp %89 : vector<8x8xf32>
    %cst_37 = arith.constant dense<0.000000e+00> : vector<8xf32>
    %91 = vector.multi_reduction <add>, %90, %cst_37 [1] : vector<8x8xf32> to vector<8xf32>
    %92 = vector.shape_cast %91 : vector<8xf32> to vector<8x1xf32>
    %93 = tpu.reciprocal %92 {approx = true} : vector<8x1xf32> -> vector<8x1xf32>
    %94 = vector.broadcast %93 : vector<8x1xf32> to vector<8x8xf32>
    %95 = arith.mulf %90, %94 : vector<8x8xf32>
    %96 = arith.truncf %95 : vector<8x8xf32> to vector<8x8xbf16>
    %cst_38 = arith.constant dense<0.000000e+00> : vector<8x8xf32>
    %97 = tpu.matmul %96, %82, %cst_38 {dimension_numbers = #tpu.dot_dimension_numbers<[1], [0], [0], [1], [0, 0, 1, 1], [], []>} : vector<8x8xbf16>, vector<8x8xbf16>, vector<8x8xf32> -> vector<8x8xf32>
    %98 = arith.truncf %97 : vector<8x8xf32> to vector<8x8xbf16>
    %99 = vector.extract_strided_slice %34 {offsets = [16, 0], sizes = [8, 32], strides = [1, 1]} : vector<32x32xbf16> to vector<8x32xbf16>
    %cst_39 = arith.constant dense<0.000000e+00> : vector<8x32xf32>
    %100 = tpu.matmul %98, %99, %cst_39 {dimension_numbers = #tpu.dot_dimension_numbers<[1], [0], [0], [1], [0, 0, 1, 1], [], []>} : vector<8x8xbf16>, vector<8x32xbf16>, vector<8x32xf32> -> vector<8x32xf32>
    %101 = arith.addf %79, %100 : vector<8x32xf32>
    %102 = vector.extract_strided_slice %27 {offsets = [0, 24], sizes = [8, 8], strides = [1, 1]} : vector<8x32xbf16> to vector<8x8xbf16>
    %103 = vector.extract_strided_slice %30 {offsets = [0, 24], sizes = [8, 8], strides = [1, 1]} : vector<8x32xbf16> to vector<8x8xbf16>
    %104 = vector.extract_strided_slice %33 {offsets = [0, 24], sizes = [8, 8], strides = [1, 1]} : vector<8x32xbf16> to vector<8x8xbf16>
    "tpu.trace_start"() <{level = 10 : i32, message = "nd,md->nm"}> : () -> ()
    %cst_40 = arith.constant dense<0.000000e+00> : vector<8x8xf32>
    %105 = tpu.matmul %102, %103, %cst_40 {dimension_numbers = #tpu.dot_dimension_numbers<[1], [1], [0], [0], [0, 0, 1, 0], [], []>} : vector<8x8xbf16>, vector<8x8xbf16>, vector<8x8xf32> -> vector<8x8xf32>
    "tpu.trace_stop"() : () -> ()
    %cst_41 = arith.constant 0.353553385 : f32
    %106 = vector.broadcast %cst_41 : f32 to vector<8x8xf32>
    %107 = arith.mulf %105, %106 : vector<8x8xf32>
    %cst_42 = arith.constant dense<0xFF800000> : vector<8xf32>
    %108 = vector.multi_reduction <maximumf>, %107, %cst_42 [1] : vector<8x8xf32> to vector<8xf32>
    %109 = vector.shape_cast %108 : vector<8xf32> to vector<8x1xf32>
    %110 = vector.broadcast %109 : vector<8x1xf32> to vector<8x8xf32>
    %111 = arith.subf %107, %110 : vector<8x8xf32>
    %112 = math.exp %111 : vector<8x8xf32>
    %cst_43 = arith.constant dense<0.000000e+00> : vector<8xf32>
    %113 = vector.multi_reduction <add>, %112, %cst_43 [1] : vector<8x8xf32> to vector<8xf32>
    %114 = vector.shape_cast %113 : vector<8xf32> to vector<8x1xf32>
    %115 = tpu.reciprocal %114 {approx = true} : vector<8x1xf32> -> vector<8x1xf32>
    %116 = vector.broadcast %115 : vector<8x1xf32> to vector<8x8xf32>
    %117 = arith.mulf %112, %116 : vector<8x8xf32>
    %118 = arith.truncf %117 : vector<8x8xf32> to vector<8x8xbf16>
    %cst_44 = arith.constant dense<0.000000e+00> : vector<8x8xf32>
    %119 = tpu.matmul %118, %104, %cst_44 {dimension_numbers = #tpu.dot_dimension_numbers<[1], [0], [0], [1], [0, 0, 1, 1], [], []>} : vector<8x8xbf16>, vector<8x8xbf16>, vector<8x8xf32> -> vector<8x8xf32>
    %120 = arith.truncf %119 : vector<8x8xf32> to vector<8x8xbf16>
    %121 = vector.extract_strided_slice %34 {offsets = [24, 0], sizes = [8, 32], strides = [1, 1]} : vector<32x32xbf16> to vector<8x32xbf16>
    %cst_45 = arith.constant dense<0.000000e+00> : vector<8x32xf32>
    %122 = tpu.matmul %120, %121, %cst_45 {dimension_numbers = #tpu.dot_dimension_numbers<[1], [0], [0], [1], [0, 0, 1, 1], [], []>} : vector<8x8xbf16>, vector<8x32xbf16>, vector<8x32xf32> -> vector<8x32xf32>
    %123 = arith.addf %101, %122 : vector<8x32xf32>
    %124 = arith.addf %1, %123 : vector<8x32xf32>
    %c0_46 = arith.constant 0 : index
    %c0_47 = arith.constant 0 : index
    %125 = vector.load %arg8[%c0_46, %c0_47] : memref<1x32xf32, #tpu.memory_space<vmem>>, vector<1x32xf32>
    %126 = vector.broadcast %125 : vector<1x32xf32> to vector<8x32xf32>
    %127 = arith.addf %124, %126 : vector<8x32xf32>
    %c0_48 = arith.constant 0 : index
    %c0_49 = arith.constant 0 : index
    %128 = vector.load %arg9[%c0_48, %c0_49] : memref<1x32xf32, #tpu.memory_space<vmem>>, vector<1x32xf32>
    %c0_50 = arith.constant 0 : index
    %c0_51 = arith.constant 0 : index
    %129 = vector.load %arg10[%c0_50, %c0_51] : memref<1x32xf32, #tpu.memory_space<vmem>>, vector<1x32xf32>
    %cst_52 = arith.constant dense<0.000000e+00> : vector<8xf32>
    %130 = vector.multi_reduction <add>, %127, %cst_52 [1] : vector<8x32xf32> to vector<8xf32>
    %131 = vector.shape_cast %130 : vector<8xf32> to vector<8x1xf32>
    %cst_53 = arith.constant 3.200000e+01 : f32
    %132 = vector.broadcast %cst_53 : f32 to vector<8x1xf32>
    %133 = arith.divf %131, %132 : vector<8x1xf32>
    %134 = vector.broadcast %133 : vector<8x1xf32> to vector<8x32xf32>
    %135 = arith.subf %127, %134 : vector<8x32xf32>
    %136 = arith.mulf %135, %135 : vector<8x32xf32>
    %cst_54 = arith.constant dense<0.000000e+00> : vector<8xf32>
    %137 = vector.multi_reduction <add>, %136, %cst_54 [1] : vector<8x32xf32> to vector<8xf32>
    %138 = vector.shape_cast %137 : vector<8xf32> to vector<8x1xf32>
    %cst_55 = arith.constant 3.200000e+01 : f32
    %139 = vector.broadcast %cst_55 : f32 to vector<8x1xf32>
    %140 = arith.divf %138, %139 : vector<8x1xf32>
    %cst_56 = arith.constant 9.99999997E-7 : f32
    %141 = vector.broadcast %cst_56 : f32 to vector<8x1xf32>
    %142 = arith.addf %140, %141 : vector<8x1xf32>
    %143 = math.rsqrt %142 : vector<8x1xf32>
    %144 = vector.broadcast %143 : vector<8x1xf32> to vector<8x32xf32>
    %145 = arith.mulf %135, %144 : vector<8x32xf32>
    %146 = vector.broadcast %128 : vector<1x32xf32> to vector<8x32xf32>
    %147 = arith.mulf %145, %146 : vector<8x32xf32>
    %148 = vector.broadcast %129 : vector<1x32xf32> to vector<8x32xf32>
    %149 = arith.addf %147, %148 : vector<8x32xf32>
    %150 = arith.truncf %149 : vector<8x32xf32> to vector<8x32xbf16>
    %c0_57 = arith.constant 0 : index
    %c0_58 = arith.constant 0 : index
    %151 = vector.load %arg11[%c0_57, %c0_58] : memref<32x128xbf16, #tpu.memory_space<vmem>>, vector<32x128xbf16>
    %cst_59 = arith.constant dense<0.000000e+00> : vector<8x128xf32>
    %152 = tpu.matmul %150, %151, %cst_59 {dimension_numbers = #tpu.dot_dimension_numbers<[1], [0], [0], [1], [0, 0, 1, 1], [], []>} : vector<8x32xbf16>, vector<32x128xbf16>, vector<8x128xf32> -> vector<8x128xf32>
    %c0_60 = arith.constant 0 : index
    %c0_61 = arith.constant 0 : index
    %153 = vector.load %arg12[%c0_60, %c0_61] : memref<1x128xf32, #tpu.memory_space<vmem>>, vector<1x128xf32>
    %154 = vector.broadcast %153 : vector<1x128xf32> to vector<8x128xf32>
    %155 = arith.addf %152, %154 : vector<8x128xf32>
    %cst_62 = arith.constant 5.000000e-01 : f32
    %156 = vector.broadcast %cst_62 : f32 to vector<8x128xf32>
    %157 = arith.mulf %156, %155 : vector<8x128xf32>
    %158 = arith.mulf %155, %155 : vector<8x128xf32>
    %159 = arith.mulf %158, %155 : vector<8x128xf32>
    %cst_63 = arith.constant 4.471500e-02 : f32
    %160 = vector.broadcast %cst_63 : f32 to vector<8x128xf32>
    %161 = arith.mulf %160, %159 : vector<8x128xf32>
    %162 = arith.addf %155, %161 : vector<8x128xf32>
    %cst_64 = arith.constant 0.797884583 : f32
    %163 = vector.broadcast %cst_64 : f32 to vector<8x128xf32>
    %164 = arith.mulf %163, %162 : vector<8x128xf32>
    %165 = math.tanh %164 : vector<8x128xf32>
    %cst_65 = arith.constant 1.000000e+00 : f32
    %166 = vector.broadcast %cst_65 : f32 to vector<8x128xf32>
    %167 = arith.addf %166, %165 : vector<8x128xf32>
    %168 = arith.mulf %157, %167 : vector<8x128xf32>
    %169 = arith.truncf %168 : vector<8x128xf32> to vector<8x128xbf16>
    %c0_66 = arith.constant 0 : index
    %c0_67 = arith.constant 0 : index
    %170 = vector.load %arg13[%c0_66, %c0_67] : memref<128x32xbf16, #tpu.memory_space<vmem>>, vector<128x32xbf16>
    %cst_68 = arith.constant dense<0.000000e+00> : vector<8x32xf32>
    %171 = tpu.matmul %169, %170, %cst_68 {dimension_numbers = #tpu.dot_dimension_numbers<[1], [0], [0], [1], [0, 0, 1, 1], [], []>} : vector<8x128xbf16>, vector<128x32xbf16>, vector<8x32xf32> -> vector<8x32xf32>
    %c0_69 = arith.constant 0 : index
    %c0_70 = arith.constant 0 : index
    %172 = vector.load %arg14[%c0_69, %c0_70] : memref<1x32xf32, #tpu.memory_space<vmem>>, vector<1x32xf32>
    %173 = vector.broadcast %172 : vector<1x32xf32> to vector<8x32xf32>
    %174 = arith.addf %171, %173 : vector<8x32xf32>
    %175 = arith.addf %127, %174 : vector<8x32xf32>
    %c0_71 = arith.constant 0 : index
    %c0_72 = arith.constant 0 : index
    %c0_73 = arith.constant 0 : index
    %176 = vector.load %arg15[%c0_71, %c0_72, %c0_73] : memref<1x8x32xf32, #tpu.memory_space<vmem>>, vector<1x8x32xf32>
    %177 = vector.shape_cast %176 : vector<1x8x32xf32> to vector<8x32xf32>
    %178 = vector.shape_cast %175 : vector<8x32xf32> to vector<1x8x32xf32>
    tpu.vector_store %arg15[%c0_71, %c0_72, %c0_73], %178 {strides = array<i32>} : memref<1x8x32xf32, #tpu.memory_space<vmem>>, vector<1x8x32xf32>,
    return
  }
  func.func @transform_0(%arg0: i32) -> (i32, i32, i32) {
    %c0_i32 = arith.constant 0 : i32
    %c0_i32_0 = arith.constant 0 : i32
    %c0_i32_1 = arith.constant 0 : i32
    return %arg0, %c0_i32, %c0_i32_0 : i32, i32, i32
  }
  func.func @transform_1(%arg0: i32) -> (i32, i32) {
    %c0_i32 = arith.constant 0 : i32
    %c0_i32_0 = arith.constant 0 : i32
    %c0_i32_1 = arith.constant 0 : i32
    return %c0_i32, %c0_i32_0 : i32, i32
  }
  func.func @transform_2(%arg0: i32) -> (i32, i32) {
    %c0_i32 = arith.constant 0 : i32
    %c0_i32_0 = arith.constant 0 : i32
    %c0_i32_1 = arith.constant 0 : i32
    return %c0_i32, %c0_i32_0 : i32, i32
  }
  func.func @transform_3(%arg0: i32) -> (i32, i32) {
    %c0_i32 = arith.constant 0 : i32
    %c0_i32_0 = arith.constant 0 : i32
    %c0_i32_1 = arith.constant 0 : i32
    return %c0_i32, %c0_i32_0 : i32, i32
  }
  func.func @transform_4(%arg0: i32) -> (i32, i32) {
    %c0_i32 = arith.constant 0 : i32
    %c0_i32_0 = arith.constant 0 : i32
    %c0_i32_1 = arith.constant 0 : i32
    return %c0_i32, %c0_i32_0 : i32, i32
  }
  func.func @transform_5(%arg0: i32) -> (i32, i32) {
    %c0_i32 = arith.constant 0 : i32
    %c0_i32_0 = arith.constant 0 : i32
    %c0_i32_1 = arith.constant 0 : i32
    return %c0_i32, %c0_i32_0 : i32, i32
  }
  func.func @transform_6(%arg0: i32) -> (i32, i32) {
    %c0_i32 = arith.constant 0 : i32
    %c0_i32_0 = arith.constant 0 : i32
    %c0_i32_1 = arith.constant 0 : i32
    return %c0_i32, %c0_i32_0 : i32, i32
  }
  func.func @transform_7(%arg0: i32) -> (i32, i32) {
    %c0_i32 = arith.constant 0 : i32
    %c0_i32_0 = arith.constant 0 : i32
    %c0_i32_1 = arith.constant 0 : i32
    return %c0_i32, %c0_i32_0 : i32, i32
  }
  func.func @transform_8(%arg0: i32) -> (i32, i32) {
    %c0_i32 = arith.constant 0 : i32
    %c0_i32_0 = arith.constant 0 : i32
    %c0_i32_1 = arith.constant 0 : i32
    return %c0_i32, %c0_i32_0 : i32, i32
  }
  func.func @transform_9(%arg0: i32) -> (i32, i32) {
    %c0_i32 = arith.constant 0 : i32
    %c0_i32_0 = arith.constant 0 : i32
    %c0_i32_1 = arith.constant 0 : i32
    return %c0_i32, %c0_i32_0 : i32, i32
  }
  func.func @transform_10(%arg0: i32) -> (i32, i32) {
    %c0_i32 = arith.constant 0 : i32
    %c0_i32_0 = arith.constant 0 : i32
    %c0_i32_1 = arith.constant 0 : i32
    return %c0_i32, %c0_i32_0 : i32, i32
  }
  func.func @transform_11(%arg0: i32) -> (i32, i32) {
    %c0_i32 = arith.constant 0 : i32
    %c0_i32_0 = arith.constant 0 : i32
    %c0_i32_1 = arith.constant 0 : i32
    return %c0_i32, %c0_i32_0 : i32, i32
  }
  func.func @transform_12(%arg0: i32) -> (i32, i32) {
    %c0_i32 = arith.constant 0 : i32
    %c0_i32_0 = arith.constant 0 : i32
    %c0_i32_1 = arith.constant 0 : i32
    return %c0_i32, %c0_i32_0 : i32, i32
  }
  func.func @transform_13(%arg0: i32) -> (i32, i32) {
    %c0_i32 = arith.constant 0 : i32
    %c0_i32_0 = arith.constant 0 : i32
    %c0_i32_1 = arith.constant 0 : i32
    return %c0_i32, %c0_i32_0 : i32, i32
  }
  func.func @transform_14(%arg0: i32) -> (i32, i32, i32) {
    %c0_i32 = arith.constant 0 : i32
    %c0_i32_0 = arith.constant 0 : i32
    %c0_i32_1 = arith.constant 0 : i32
    return %arg0, %c0_i32, %c0_i32_0 : i32, i32, i32
  }
}

</mosaic_0001>

<bundles_post_ra>
// kernel: tpu_custom_call.1
= control target key start
LH: loop header
LB: loop body
LE: loop exit
PB: predicated region body
PF: predicated region fallthrough
CT: control target
= control target key end

     0   :  { %s2669_s0 = inlined_call_operand.vmem [shape: f32[2,8,32], index: 0, kind: input, shape index: {}]   ;;  %s2670_s1 = inlined_call_operand.vmem [shape: f32[1,32], index: 1, kind: input, shape index: {}]   ;;  %s2671_s2 = inlined_call_operand.vmem [shape: f32[1,32], index: 2, kind: input, shape index: {}]   ;;  %s2672_s3 = inlined_call_operand.vmem [shape: bf16[32,32], index: 3, kind: input, shape index: {}]   ;;  %s2673_s4 = inlined_call_operand.vmem [shape: bf16[32,32], index: 4, kind: input, shape index: {}]   ;;  %s2674_s5 = inlined_call_operand.vmem [shape: bf16[32,32], index: 5, kind: input, shape index: {}]   ;;  %s2675_s6 = inlined_call_operand.vmem [shape: bf16[32,32], index: 6, kind: input, shape index: {}]   ;;  %s2676_s7 = inlined_call_operand.hbm [shape: f32[1,32], index: 7, kind: input, shape index: {}]   ;;  %s2677_s8 = inlined_call_operand.hbm [shape: f32[1,32], index: 8, kind: input, shape index: {}]   ;;  %s2678_s9 = inlined_call_operand.hbm [shape: f32[1,32], index: 9, kind: input, shape index: {}]   ;;  %s2679_s10 = inlined_call_operand.vmem [shape: bf16[32,128], index: 10, kind: input, shape index: {}]   ;;  %s2680_s11 = inlined_call_operand.vmem [shape: f32[1,128], index: 11, kind: input, shape index: {}]   ;;  %s2681_s12 = inlined_call_operand.vmem [shape: bf16[128,32], index: 12, kind: input, shape index: {}]   ;;  %s2682_s13 = inlined_call_operand.vmem [shape: f32[1,32], index: 13, kind: input, shape index: {}]   ;;  %s2683_s14 = inlined_call_operand.hbm [shape: f32[2,8,32], index: 14, kind: output, shape index: {}]  }
   0x1   :  { %2696 = sst [smem:[#allocation19_spill]] %s2683_s14 }
   0x2   :  { %19 = vsyncpa [#allocation3], 0 }
   0x3   :  { %20 = vsyncpa [#allocation6], 0 }
   0x4   :  { %21 = vsyncpa [#allocation4], 0 }
   0x5   :  { %23 = vsyncpa [#allocation4 + $0x1], 0  ;;  %s2255_s29 = smov 0   ;;  %s2257_s30 = smov 0  }
   0x6   :  { %s2259_s15 = smov 0   ;;  %s2261_s16 = smov 0  }
   0x7 LB: > { %2697 = sst [smem:[#allocation12_spill]] %s2157_s29  ;;  %s2276_s17 = sadd.s32 4294967295, %s2169_s16   ;;  %s2169_s16 = sphi %s2261_s16, %s2721_s16   ;;  %s2165_s15 = sphi %s2259_s15, %s2723_s15   ;;  %s2161_s30 = sphi %s2257_s30, %s2725_s30   ;;  %s2157_s29 = sphi %s2255_s29, %s2724_s29  }
   0x8   : > { %2698 = sst [smem:[#allocation13_spill]] %s2165_s15  ;;  %s1678_s18 = sadd.s32 4294967294, %s2169_s16  }
   0x9   : > { %2699 = sst [smem:[#allocation14_spill]] %s2169_s16  ;;  %s2280_s19 = sadd.s32 1, %s2169_s16  }
   0xa   : > { %2700 = sst [smem:[#allocation15_spill]] %s2280_s19  ;;  %s335_s20 = sadd.s32 1, %s2165_s15 }
   0xb   : > { %s332_s21 = ssub.s32 %s2169_s16, %s2280_s19  ;;  %p345_p0 = scmp.ne.s32.totalorder %s2165_s15, %s2161_s30 }
   0xc   : > { %p333_p1 = scmp.eq.s32.totalorder %s332_s21, 0  ;;  %p346_p2 = scmp.eq.s32.totalorder %s2276_s17, 1 }
   0xd   : > { %p351_p3 = scmp.ne.s32.totalorder %s2161_s30, %s2157_s29  ;;  %p352_p4 = scmp.eq.s32.totalorder %s1678_s18, 1 }
   0xe   : > { %s2291_s22 = scalar_select %p333_p1, %s2165_s15, %s335_s20  }
   0xf   : > { %p2293_p5 = por %p346_p2, %p345_p0  ;;  %p2297_p6 = por %p352_p4, %p351_p3 }
  0x10   : > { %2701 = sst [smem:[#allocation16_spill]] %s2291_s22  ;;  %p1679_p7 = scmp.ge.s32.totalorder %s2169_s16, 1 }
  0x11   : > { %s2702_s23 = scalar_select %p2293_p5, 1, 0 }
  0x12   : > { %s2704_s24 = scalar_select %p2297_p6, 1, 0 }
  0x13   : > { %2703 = sst [smem:[#allocation17_spill]] %s2702_s23  ;;  %p359_p8 = scmp.lt.s32.totalorder %s2169_s16, 3 }
  0x14   : > { %2705 = sst [smem:[#allocation18_spill]] %s2704_s24  ;;  %p2690_p9 = scmp.eq.s32.totalorder %s2276_s17, 0 }
  0x15   : > { %p2304_p10 = pnand %p1679_p7, %p359_p8  ;;  %s2171_s26 = smov [#allocation5]  }
  0x16   : > { %s401_s27 = sshll.u32 %s2171_s26, 4  ;;  %s2172_s28 = smov [#allocation2]   ;;  %s402_s27 = int_to_ptr.vmem [resolvable:$true] %s401_s27 }
  0x17   : > { %s2706_s25 = scalar_select %p2304_p10, 1, 0 }
  0x18   : > { %p1916_p11 = pneg %p2304_p10  ;;  %s390_s18 = sshll.u32 %s2172_s28, 4  ;;  %s2316_s18 = int_to_ptr.vmem [resolvable:$true] %s390_s18 }
  0x19   : > { %s2173_s21 = smov [#allocation7]   ;;  %s2015_s26 = scalar_lea.hbm %s2677_s8, 16 }
  0x1a   : > { %p2312_p12 = pnand %p2690_p9, %p1916_p11  ;;  %s412_s22 = sshll.u32 %s2173_s21, 4  ;;  %s2318_s22 = int_to_ptr.vmem [resolvable:$true] %s412_s22 }
  0x1b   : > { %p2016_p13 = scmp.ne.s32.totalorder %s2677_s8, %s2015_s26  ;;  %p2022_p3 = scmp.lt.u32.totalorder %s2015_s26, %s2677_s8 }
  0x1c   : > { %p2328_p0 = pneg %p2312_p12 }
  0x1e   : > { %p2018_p1 = pnand %p2328_p0, %p2016_p13 }
  0x20   : > { %p2019_p2 = pneg %p2018_p1 }
  0x22   : > { %p2024_p4 = pnand %p2022_p3, %p2019_p2 }
  0x24   : > { %2027 = shalt.err (!%p2024_p4)
}
  0x25   : > { %s2028_s15 = scalar_lea.vmem %s402_s27, 16  ;;  %s2035_s29 = scalar_lea.vmem %s402_s27, 32 }
  0x26   : > { %p2029_p7 = scmp.ne.s32.totalorder %s402_s27, %s2028_s15  ;;  %p2036_p9 = scmp.lt.s32.totalorder %s402_s27, %s402_s27 }
  0x27   : > { %p2037_p6 = scmp.lt.s32.totalorder %s2035_s29, %s2028_s15 }
  0x28   : > { %p2031_p8 = pnand %p2029_p7, %p2328_p0 }
  0x29   : > { %p2038_p5 = por %p2037_p6, %p2036_p9 }
  0x2a   : > { %p2032_p11 = pneg %p2031_p8 }
  0x2c   : > { %p2039_p10 = pnand %p2038_p5, %p2032_p11 }
  0x2e   : > { %2042 = shalt.err (!%p2039_p10)
}
  0x2f   : > { %1922 = dma.hbm_to_vmem [thread:$0]  (!%p2312_p12), %s2677_s8, 16, %s402_s27, [#allocation6]  }
  0x30   : > { %s2043_s21 = scalar_lea.hbm %s2676_s7, 16 }
  0x31   : > { %p2044_p13 = scmp.ne.s32.totalorder %s2676_s7, %s2043_s21  ;;  %p2050_p5 = scmp.lt.u32.totalorder %s2043_s21, %s2676_s7 }
  0x33   : > { %p2046_p1 = pnand %p2044_p13, %p2328_p0 }
  0x35   : > { %p2047_p6 = pneg %p2046_p1 }
  0x37   : > { %p2052_p9 = pnand %p2050_p5, %p2047_p6 }
  0x39   : > { %2055 = shalt.err (!%p2052_p9)
}
  0x3a   : > { %s2056_s27 = scalar_lea.vmem %s2316_s18, 16  ;;  %s2063_s14 = scalar_lea.vmem %s2316_s18, 32 }
  0x3b   : > { %p2057_p10 = scmp.ne.s32.totalorder %s2316_s18, %s2056_s27  ;;  %p2064_p4 = scmp.lt.s32.totalorder %s2316_s18, %s2316_s18 }
  0x3c   : > { %p2065_p7 = scmp.lt.s32.totalorder %s2063_s14, %s2056_s27 }
  0x3d   : > { %p2059_p2 = pnand %p2057_p10, %p2328_p0 }
  0x3e   : > { %p2066_p8 = por %p2065_p7, %p2064_p4 }
  0x3f   : > { %p2060_p3 = pneg %p2059_p2 }
  0x41   : > { %p2067_p11 = pnand %p2066_p8, %p2060_p3 }
  0x43   : > { %2070 = shalt.err (!%p2067_p11)
}
  0x44   : > { %1919 = dma.hbm_to_vmem [thread:$0]  (!%p2312_p12), %s2676_s7, 16, %s2316_s18, [#allocation3]  }
  0x45   : > { %s2071_s26 = scalar_lea.hbm %s2678_s9, 16 }
  0x46   : > { %p2072_p13 = scmp.ne.s32.totalorder %s2678_s9, %s2071_s26  ;;  %p2078_p5 = scmp.lt.u32.totalorder %s2071_s26, %s2678_s9 }
  0x48   : > { %p2074_p1 = pnand %p2072_p13, %p2328_p0 }
  0x4a   : > { %p2075_p6 = pneg %p2074_p1 }
  0x4c   : > { %p2080_p9 = pnand %p2078_p5, %p2075_p6 }
  0x4e   : > { %2083 = shalt.err (!%p2080_p9)
}
  0x4f   : > { %s2084_s18 = scalar_lea.vmem %s2318_s22, 16  ;;  %s2091_s14 = scalar_lea.vmem %s2318_s22, 32 }
  0x50   : > { %p2085_p10 = scmp.ne.s32.totalorder %s2318_s22, %s2084_s18  ;;  %p2092_p4 = scmp.lt.s32.totalorder %s2318_s22, %s2318_s22 }
  0x51   : > { %p2093_p7 = scmp.lt.s32.totalorder %s2091_s14, %s2084_s18 }
  0x52   : > { %p2087_p2 = pnand %p2085_p10, %p2328_p0 }
  0x53   : > { %p2094_p8 = por %p2093_p7, %p2092_p4 }
  0x54   : > { %p2088_p3 = pneg %p2087_p2 }
  0x56   : > { %p2095_p11 = pnand %p2094_p8, %p2088_p3 }
  0x58   : > { %2098 = shalt.err (!%p2095_p11)
}
  0x59   : > { %1925 = dma.hbm_to_vmem [thread:$0]  (!%p2312_p12), %s2678_s9, 16, %s2318_s22, [#allocation6]  }
  0x5a   : > { %p2709_p13 = scmp.ne.s32.totalorder %s2706_s25, 0 }
  0x5b   : > { %p2710_p0 = scmp.eq.s32.totalorder (!%p2709_p13), %s2276_s17, 0 }
  0x5c   : > { %444 = sbr.rel (%p2709_p13) target bundleno = 3808 (0xee0), region = 76 }
  0x63   : > { %2144 = dma.done.wait (%p2710_p0), [#allocation3], 16   ;;  %p2711_p1 = pmov %p2710_p0 }
  0x64   : > { %p2712_p6 = pmov %p2710_p0 }
  0x65   : > { %2146 = vsyncadd (%p2711_p1), [#allocation3], 4294967280 }
  0x66   : > { %2148 = dma.done.wait (%p2712_p6), [#allocation6], 32   ;;  %p2713_p5 = pmov %p2710_p0 }
  0x67   : > { %p497_p9 = scmp.lt.s32.totalorder %s2276_s17, 1  ;;  %vm505_vm0 = vcmask 261120   ;;  %v1977_v7 = vld [vmem:[%s2672_s3] sm:$0xff]   ;;  %v2174_v8 = vmov 0.0   ;;  %vm2175_vm1 = vmmov 0   ;;  %v1978_v9 = vld [vmem:[%s2672_s3 + $0x8] sm:$0xff]  }
  0x68   : > { %2150 = vsyncadd (%p2713_p5), [#allocation6], 4294967264  ;;  %1778 = vmatprep.subr.bf16.mxu1 %v2174_v8  ;;  %1782 = vmatprep.mubr.msk.bf16.mxu1 %vm2175_vm1, %v2174_v8  ;;  %v1690_v14 = vld [vmem:[%s2670_s1] ss:$0 sm:$0xff]  ;;  %v1980_v21 = vld [vmem:[%s2673_s4 + $0x8] sm:$0xff]   ;;  %vm713_vm2 = vcmask 64512  }
  0x69   : > { %s498_s20 = scalar_select %p497_p9, %s2276_s17, 1  ;;  %1779 = vmatpush3.bf16.msra.mxu1 %v1977_v7  ;;  %1808 = vmatprep.subr.bf16.mxu0 %v2174_v8  ;;  %v1691_v16 = vld [vmem:[%s2671_s2] ss:$0 sm:$0xff]  ;;  %v1982_v23 = vld [vmem:[%s2674_s5 + $0x8] sm:$0xff]   ;;  %vm776_vm3 = vcmask 1043456  }
  0x6a   : > { %1780 = vmatprep.subr.bf16.mxu1 %v2174_v8  ;;  %1810 = vmatprep.mubr.msk.bf16.mxu0 %vm2175_vm1, %v2174_v8  ;;  %v1979_v19 = vld [vmem:[%s2673_s4] sm:$0xff]   ;;  %s2176_s26 = smov 120   ;;  %s2177_s21 = smov 112  }
  0x6b   : > { %s1689_s22 = sshll.u32 %s498_s20, 3  ;;  %v1981_v22 = vld [vmem:[%s2674_s5] sm:$0xff]   ;;  %s2178_s14 = smov 104  }
  0x6c   : > { %s500_s24 = scalar_lea.vmem %s2669_s0, %s1689_s22  ;;  %v710_v7 = vld [vmem:[%s2675_s6 + $0x4] sm:$0xf]  ;;  %s494_s29 = sand.u32 1, %s2161_s30  }
  0x6d   : > { %v2407_v0 = vld [vmem:[%s500_s24] sm:$0xff]  ;;  %1781 = vmatpush3.bf16.msra.mxu1 %v1978_v9  ;;  %v940_v9 = vsel %vm776_vm3, %v710_v7, 0  ;;  %s1688_s27 = sshll.u32 %s494_s29, 3  ;;  %s2714_s23 = sld [smem:[#allocation17_spill]] }
  0x6e   : > { %v506_v1 = vsel %vm505_vm0, %v2407_v0, 0.0  ;;  %1786 = vmatprep.subr.bf16.mxu1 %v2174_v8  ;;  %s1730_s19 = sshll.u32 %s2276_s17, 7  ;;  %s496_s20 = scalar_lea.vmem [#allocation8], %s1688_s27 }
  0x6f   : > { %507 = vadd.xlane.f32.xlu0 %v506_v1  ;;  %s1588_s22 = sshll.u32 %s496_s20, 4  ;;  %s2715_s24 = sld [smem:[#allocation19_spill]]  ;;  %s2628_s22 = int_to_ptr.vmem [resolvable:$true] %s1588_s22 }
  0x70   : > { %s1575_s17 = scalar_lea.sflag [#allocation4], %s494_s29 }
  0x73   : > { %p2716_p10 = scmp.ne.s32.totalorder %s2714_s23, 0 }
  0x75   : > { %s2626_s16 = scalar_lea.hbm %s2715_s24, %s1730_s19 }
  0xfc   : > { %v508_v2 = vpop.xlane.xlu0 %507 }
  0xfd   : > { %v510_v3 = vmul.f32 0.03125, %v508_v2 }
  0xff   : > { %v511_v4 = vsub.f32 %v2407_v0, %v510_v3 }
 0x101   : > { %v512_v5 = vmul.f32 %v511_v4, %v511_v4 }
 0x103   : > { %v513_v6 = vsel %vm505_vm0, %v512_v5, 0.0 }
 0x104   : > { %514 = vadd.xlane.f32.xlu0 %v513_v6 }
 0x191   : > { %v515_v10 = vpop.xlane.xlu0 %514 }
 0x192   : > { %v516_v11 = vmul.f32 0.03125, %v515_v10 }
 0x194   : > { %v517_v12 = vadd.f32 1e-06, %v516_v11 }
 0x196   : > { %1993 = vrsqrt.f32 %v517_v12 }
 0x1a0   : > { %v1994_v13 = vpop.eup %1993 }
 0x1a1   : > { %v519_v15 = vmul.f32 %v1994_v13, %v511_v4 }
 0x1a3   : > { %v526_v17 = vmul.f32 %v1690_v14, %v519_v15  ;;  %v709_v14 = vld [vmem:[%s2675_s6] sm:$0xf] }
 0x1a5   : > { %v533_v18 = vadd.f32 %v1691_v16, %v526_v17  ;;  %v986_v17 = vsel %vm776_vm3, %v709_v14, 0 }
 0x1a7   : > { %v534_v20 = vpack.c.bf16 %v533_v18, %v533_v18 }
 0x1a9   : > { %1783 = vmatmul.mubr.msk.bf16.vlgmr.msra.gmra.mrb[0].mxu1 %vm505_vm0, %v534_v20 }
 0x1aa   : > { %1787 = vmatpush3.bf16.msra.mxu1 %v1979_v19  ;;  %1790 = vmatprep.mubr.msk.bf16.mxu1 %vm2175_vm1, %v2174_v8 }
 0x1ab   : > { %1788 = vmatprep.subr.bf16.mxu1 %v2174_v8 }
 0x1ae   : > { %1789 = vmatpush3.bf16.msra.mxu1 %v1980_v21 }
 0x1af   : > { %1794 = vmatprep.subr.bf16.mxu1 %v2174_v8 }
 0x1b1   : > { %1791 = vmatmul.mubr.msk.bf16.vlgmr.msra.gmra.mrb[4].mxu1 %vm505_vm0, %v534_v20 }
 0x1b2   : > { %1795 = vmatpush3.bf16.msra.mxu1 %v1981_v22  ;;  %1798 = vmatprep.mubr.msk.bf16.mxu1 %vm2175_vm1, %v2174_v8 }
 0x1b3   : > { %1796 = vmatprep.subr.bf16.mxu1 %v2174_v8 }
 0x1b6   : > { %1797 = vmatpush3.bf16.msra.mxu1 %v1982_v23 }
 0x1b7   : > { %1802 = vmatprep.subr.bf16.mxu1 %v2174_v8 }
 0x1b9   : > { %1799 = vmatmul.mubr.msk.bf16.vlgmr.msra.gmra.mrb[8].mxu1 %vm505_vm0, %v534_v20 }
 0x1ba   : > { %1804 = vmatprep.mubr.msk.bf16.mxu1 %vm2175_vm1, %v2174_v8 }
 0x27c   : > { %v588_v24 = vpop.f32.mrb[0].mxu1 }
 0x27d   : > { %v1784_v25 = vpop.f32.mrb[1].mxu1  ;;  %v2464_v34 = vpack.c.bf16 %v588_v24, %v588_v24 }
 0x27e   : > { %v591_v26 = vpop.f32.mrb[2].mxu1 }
 0x27f   : > { %v1785_v27 = vpop.f32.mrb[3].mxu1 }
 0x284   : > { %v645_v28 = vpop.f32.mrb[4].mxu1 }
 0x285   : > { %v2458_v29 = vpack.c.bf16 %v645_v28, %v645_v28  ;;  %v1792_v30 = vpop.f32.mrb[5].mxu1 }
 0x286   : > { %v648_v31 = vpop.f32.mrb[6].mxu1 }
 0x287   : > { %825 = vrot.lane.b32.xlu1 %v2458_v29, %s2176_s26  ;;  %v1793_v32 = vpop.f32.mrb[7].mxu1  ;;  %v718_v33 = vsel %vm713_vm2, %v2458_v29, 0 }
 0x288   : > { %1803 = vmatpush3.bf16.xpose.msra.mxu1 %v718_v33 }
 0x289   : > { %1814 = vmatprep.subr.bf16.mxu1 %v2174_v8 }
 0x28b   : > { %822 = vrot.lane.b32.xlu1 %v2464_v34, %s2176_s26 }
 0x28c   : > { %v702_v35 = vpop.f32.mrb[8].mxu1 }
 0x28d   : > { %v2469_v36 = vpack.c.bf16 %v702_v35, %v702_v35  ;;  %v1800_v37 = vpop.f32.mrb[9].mxu1 }
 0x28e   : > { %v705_v38 = vpop.f32.mrb[10].mxu1 }
 0x28f   : > { %v1801_v39 = vpop.f32.mrb[11].mxu1  ;;  %1805 = vmatmul.mubr.msk.bf16.vlgmr.msra.gmra.mrb[12].mxu1 %vm713_vm2, %v2464_v34  ;;  %v778_v40 = vsel %vm776_vm3, %v2469_v36, 0 }
 0x290   : > { %1809 = vmatpush3.bf16.msra.mxu0 %v778_v40  ;;  %1816 = vmatprep.mubr.msk.bf16.mxu1 %vm2175_vm1, %v2174_v8 }
 0x291   : > { %1820 = vmatprep.subr.bf16.mxu0 %v2174_v8 }
 0x2f9   : > { %v826_v41 = vpop.permute.xlu1 %825 }
 0x2fa   : > { %v831_v42 = vsel %vm713_vm2, %v826_v41, 0 }
 0x2fb   : > { %1815 = vmatpush3.bf16.xpose.msra.mxu1 %v831_v42 }
 0x2fc   : > { %1826 = vmatprep.subr.bf16.mxu1 %v2174_v8 }
 0x2fd   : > { %v823_v43 = vpop.permute.xlu1 %822 }
 0x302   : > { %1817 = vmatmul.mubr.msk.bf16.vlgmr.msra.gmra.mrb[16].mxu1 %vm713_vm2, %v823_v43 }
 0x303   : > { %1828 = vmatprep.mubr.msk.bf16.mxu1 %vm2175_vm1, %v2174_v8  ;;  %1827 = vmatpush3.bf16.msra.mxu1 %v940_v9 }
 0x304   : > { %1838 = vmatprep.subr.bf16.mxu1 %v2174_v8 }
 0x362   : > { %v754_v44 = vpop.f32.mrb[12].mxu1 }
 0x363   : > { %v760_v45 = vmul.f32 0.35355338, %v754_v44  ;;  %v1806_v46 = vpop.f32.mrb[13].mxu1 }
 0x364   : > { %v757_v47 = vpop.f32.mrb[14].mxu1 }
 0x365   : > { %v1807_v48 = vpop.f32.mrb[15].mxu1  ;;  %v761_v49 = vsel %vm713_vm2, %v760_v45, -inf }
 0x366   : > { %762 = vmax.xlane.f32.xlu0 %v761_v49 }
 0x3d5   : > { %v867_v50 = vpop.f32.mrb[16].mxu1 }
 0x3d6   : > { %v873_v51 = vmul.f32 0.35355338, %v867_v50  ;;  %v1818_v52 = vpop.f32.mrb[17].mxu1 }
 0x3d7   : > { %v870_v53 = vpop.f32.mrb[18].mxu1 }
 0x3d8   : > { %v1819_v54 = vpop.f32.mrb[19].mxu1  ;;  %v874_v55 = vsel %vm713_vm2, %v873_v51, -inf }
 0x3d9   : > { %875 = vmax.xlane.f32.xlu1 %v874_v55 }
 0x3ea   : > { %1028 = vrot.lane.b32.xlu1 %v2464_v34, %s2177_s21 }
 0x3f3   : > { %v763_v56 = vpop.xlane.xlu0 %762 }
 0x3f4   : > { %v764_v57 = vsub.f32 %v760_v45, %v763_v56 }
 0x3f6   : > { %v765_v58 = vmul.f32 1.442695, %v764_v57 }
 0x3f8   : > { %1995 = vpow2.f32 %v765_v58 }
 0x402   : > { %v1996_v59 = vpop.eup %1995 }
 0x403   : > { %v767_v60 = vsel %vm713_vm2, %v1996_v59, 0.0 }
 0x404   : > { %768 = vadd.xlane.f32.xlu0 %v767_v60 }
 0x466   : > { %v876_v61 = vpop.xlane.xlu1 %875 }
 0x467   : > { %v877_v62 = vsub.f32 %v873_v51, %v876_v61 }
 0x469   : > { %v878_v63 = vmul.f32 1.442695, %v877_v62 }
 0x46a   : > { %v1029_v31 = vpop.permute.xlu1 %1028 }
 0x46b   : > { %1997 = vpow2.f32 %v878_v63 }
 0x475   : > { %v1998_v1 = vpop.eup %1997 }
 0x476   : > { %v880_v2 = vsel %vm713_vm2, %v1998_v1, 0.0 }
 0x477   : > { %881 = vadd.xlane.f32.xlu0 %v880_v2 }
 0x48d   : > { %887 = vrot.lane.b32.xlu0 %v2469_v36, %s2176_s26  ;;  %s2099_s26 = scalar_lea.vmem %s2628_s22, 128 }
 0x48e   : > { %p2100_p12 = scmp.ne.s32.totalorder %s2628_s22, %s2099_s26 }
 0x490   : > { %p2101_p2 = pnand %p2100_p12, %p2716_p10 }
 0x491   : > { %v769_v3 = vpop.xlane.xlu0 %768  ;;  %1030 = vrot.lane.b32.xlu0 %v2458_v29, %s2177_s21 }
 0x492   : > { %1999 = vrcp.f32 %v769_v3  ;;  %p2102_p3 = pneg %p2101_p2 }
 0x49c   : > { %v2000_v4 = vpop.eup %1999 }
 0x49d   : > { %v771_v5 = vmul.f32 %v2000_v4, %v1996_v59 }
 0x49f   : > { %v772_v6 = vpack.c.bf16 %v771_v5, %v771_v5 }
 0x4a1   : > { %1811 = vmatmul.mubr.msk.bf16.vlgmr.msra.gmra.mrb[0].mxu0 %vm713_vm2, %v772_v6 }
 0x4a2   : > { %1822 = vmatprep.mubr.msk.bf16.mxu0 %vm2175_vm1, %v2174_v8 }
 0x504   : > { %v882_v10 = vpop.xlane.xlu0 %881 }
 0x505   : > { %2001 = vrcp.f32 %v882_v10 }
 0x508   : > { %v888_v11 = vpop.permute.xlu0 %887 }
 0x509   : > { %v893_v12 = vsel %vm776_vm3, %v888_v11, 0 }
 0x50a   : > { %1821 = vmatpush3.bf16.msra.mxu0 %v893_v12 }
 0x50b   : > { %1832 = vmatprep.subr.bf16.mxu0 %v2174_v8 }
 0x50c   : > { %v1031_v23 = vpop.permute.xlu0 %1030 }
 0x50d   : > { %v1036_v28 = vsel %vm713_vm2, %v1031_v23, 0 }
 0x50f   : > { %v2002_v13 = vpop.eup %2001 }
 0x510   : > { %v884_v15 = vmul.f32 %v2002_v13, %v1998_v1 }
 0x512   : > { %v885_v16 = vpack.c.bf16 %v884_v15, %v884_v15 }
 0x514   : > { %1823 = vmatmul.mubr.msk.bf16.vlgmr.msra.gmra.mrb[4].mxu0 %vm713_vm2, %v885_v16 }
 0x515   : > { %1833 = vmatpush3.bf16.msra.mxu0 %v986_v17  ;;  %1834 = vmatprep.mubr.msk.bf16.mxu0 %vm2175_vm1, %v2174_v8 }
 0x516   : > { %1844 = vmatprep.subr.bf16.mxu0 %v2174_v8 }
 0x574   : > { %v814_v18 = vpop.f32.mrb[0].mxu0 }
 0x575   : > { %v820_v19 = vpack.c.bf16 %v814_v18, %v814_v18  ;;  %v1812_v20 = vpop.f32.mrb[1].mxu0 }
 0x576   : > { %v817_v21 = vpop.f32.mrb[2].mxu0 }
 0x577   : > { %v1813_v22 = vpop.f32.mrb[3].mxu0  ;;  %1835 = vmatmul.mubr.msk.bf16.vlgmr.msra.gmra.mrb[8].mxu0 %vm713_vm2, %v820_v19  ;;  %v712_v19 = vld [vmem:[%s2675_s6 + $0xc] sm:$0xf] }
 0x578   : > { %1846 = vmatprep.mubr.msk.bf16.mxu0 %vm2175_vm1, %v2174_v8 }
 0x5e7   : > { %v929_v24 = vpop.f32.mrb[4].mxu0 }
 0x5e8   : > { %v935_v25 = vpack.c.bf16 %v929_v24, %v929_v24  ;;  %v1824_v26 = vpop.f32.mrb[5].mxu0 }
 0x5e9   : > { %v932_v27 = vpop.f32.mrb[6].mxu0 }
 0x5ea   : > { %v1825_v30 = vpop.f32.mrb[7].mxu0  ;;  %1829 = vmatmul.mubr.msk.bf16.vlgmr.msra.gmra.mrb[20].mxu1 %vm713_vm2, %v935_v25 }
 0x5eb   : > { %1839 = vmatpush3.bf16.xpose.msra.mxu1 %v1036_v28  ;;  %1840 = vmatprep.mubr.msk.bf16.mxu1 %vm2175_vm1, %v2174_v8 }
 0x5ec   : > { %1850 = vmatprep.subr.bf16.mxu1 %v2174_v8 }
 0x5f2   : > { %1841 = vmatmul.mubr.msk.bf16.vlgmr.msra.gmra.mrb[24].mxu1 %vm713_vm2, %v1029_v31 }
 0x5f3   : > { %1852 = vmatprep.mubr.msk.bf16.mxu1 %vm2175_vm1, %v2174_v8 }
 0x64a   : > { %v1022_v32 = vpop.f32.mrb[8].mxu0 }
 0x64b   : > { %v1836_v33 = vpop.f32.mrb[9].mxu0 }
 0x64c   : > { %v1025_v35 = vpop.f32.mrb[10].mxu0 }
 0x64d   : > { %v1837_v37 = vpop.f32.mrb[11].mxu0 }
 0x6bd   : > { %v976_v38 = vpop.f32.mrb[20].mxu1 }
 0x6be   : > { %v2522_v39 = vadd.f32 %v1022_v32, %v976_v38  ;;  %v1830_v40 = vpop.f32.mrb[21].mxu1 }
 0x6bf   : > { %v979_v41 = vpop.f32.mrb[22].mxu1  ;;  %v1713_v40 = vld [vmem:[#allocation2] ss:$0 sm:$0xff] }
 0x6c0   : > { %v1831_v42 = vpop.f32.mrb[23].mxu1 }
 0x6c5   : > { %v1072_v43 = vpop.f32.mrb[24].mxu1 }
 0x6c6   : > { %v1078_v44 = vmul.f32 0.35355338, %v1072_v43  ;;  %v1842_v45 = vpop.f32.mrb[25].mxu1 }
 0x6c7   : > { %v1075_v46 = vpop.f32.mrb[26].mxu1 }
 0x6c8   : > { %v1843_v47 = vpop.f32.mrb[27].mxu1  ;;  %v1079_v48 = vsel %vm713_vm2, %v1078_v44, -inf }
 0x6c9   : > { %1080 = vmax.xlane.f32.xlu0 %v1079_v48 }
 0x6df   : > { %1091 = vrot.lane.b32.xlu0 %v2469_v36, %s2177_s21  ;;  %s2179_s21 = smov [#allocation8]  }
 0x6e0   : > { %s2103_s15 = sshll.u32 %s2179_s21, 4  ;;  %s2104_s15 = int_to_ptr.vmem [resolvable:$false] %s2103_s15 }
 0x6e1   : > { %s2105_s27 = scalar_lea.vmem %s2104_s15, 256  ;;  %p2106_p4 = scmp.lt.s32.totalorder %s2628_s22, %s2104_s15 }
 0x6e2   : > { %p2107_p7 = scmp.lt.s32.totalorder %s2105_s27, %s2099_s26 }
 0x6e3   : > { %1187 = vrot.lane.b32.xlu0 %v2464_v34, %s2178_s14 }
 0x6e4   : > { %p2108_p8 = por %p2107_p7, %p2106_p4 }
 0x6e6   : > { %p2109_p11 = pnand %p2108_p8, %p2102_p3 }
 0x756   : > { %v1081_v49 = vpop.xlane.xlu0 %1080 }
 0x757   : > { %v1082_v50 = vsub.f32 %v1078_v44, %v1081_v49 }
 0x759   : > { %v1083_v51 = vmul.f32 1.442695, %v1082_v50 }
 0x75a   : > { %v1092_v52 = vpop.permute.xlu0 %1091 }
 0x75b   : > { %2003 = vpow2.f32 %v1083_v51  ;;  %v1097_v53 = vsel %vm776_vm3, %v1092_v52, 0  ;;  %v1983_v51 = vld [vmem:[%s2679_s10] sm:$0xff]  }
 0x75c   : > { %1845 = vmatpush3.bf16.msra.mxu0 %v1097_v53  ;;  %v1985_v52 = vld [vmem:[%s2681_s12] sm:$0xff]  }
 0x75d   : > { %1856 = vmatprep.subr.bf16.mxu0 %v2174_v8 }
 0x75e   : > { %v1188_v61 = vpop.permute.xlu0 %1187 }
 0x765   : > { %v2004_v54 = vpop.eup %2003 }
 0x766   : > { %v1085_v55 = vsel %vm713_vm2, %v2004_v54, 0.0 }
 0x767   : > { %1086 = vadd.xlane.f32.xlu1 %v1085_v55 }
 0x778   : > { %1189 = vrot.lane.b32.xlu1 %v2458_v29, %s2178_s14  ;;  %v711_v29 = vld [vmem:[%s2675_s6 + $0x8] sm:$0xf] }
 0x779   : > { %v1144_v62 = vsel %vm776_vm3, %v711_v29, 0  ;;  %v1986_v29 = vld [vmem:[%s2681_s12 + $0x8] sm:$0xff]  }
 0x77a   : > { %1851 = vmatpush3.bf16.msra.mxu1 %v1144_v62  ;;  %v1987_v62 = vld [vmem:[%s2681_s12 + $0x10] sm:$0xff]  }
 0x77b   : > { %1862 = vmatprep.subr.bf16.mxu1 %v2174_v8 }
 0x7f4   : > { %v1087_v56 = vpop.xlane.xlu1 %1086 }
 0x7f5   : > { %2005 = vrcp.f32 %v1087_v56 }
 0x7f8   : > { %v1190_v58 = vpop.permute.xlu1 %1189 }
 0x7f9   : > { %v1195_v60 = vsel %vm713_vm2, %v1190_v58, 0  ;;  %v1715_v58 = vld [vmem:[#allocation7] ss:$0 sm:$0xff] }
 0x7ff   : > { %v2006_v34 = vpop.eup %2005 }
 0x800   : > { %v1089_v57 = vmul.f32 %v2006_v34, %v2004_v54  ;;  %v1714_v34 = vld [vmem:[#allocation5] ss:$0 sm:$0xff] }
 0x802   : > { %v1090_v59 = vpack.c.bf16 %v1089_v57, %v1089_v57 }
 0x804   : > { %1847 = vmatmul.mubr.msk.bf16.vlgmr.msra.gmra.mrb[12].mxu0 %vm713_vm2, %v1090_v59 }
 0x805   : > { %1857 = vmatpush3.bf16.xpose.msra.mxu0 %v1195_v60  ;;  %1858 = vmatprep.mubr.msk.bf16.mxu0 %vm2175_vm1, %v2174_v8 }
 0x806   : > { %1868 = vmatprep.subr.bf16.mxu0 %v2174_v8 }
 0x80c   : > { %1859 = vmatmul.mubr.msk.bf16.vlgmr.msra.gmra.mrb[16].mxu0 %vm713_vm2, %v1188_v61 }
 0x80d   : > { %1870 = vmatprep.mubr.msk.bf16.mxu0 %vm2175_vm1, %v2174_v8 }
 0x8d7   : > { %v1133_v63 = vpop.f32.mrb[12].mxu0 }
 0x8d8   : > { %v1139_v1 = vpack.c.bf16 %v1133_v63, %v1133_v63  ;;  %v1848_v2 = vpop.f32.mrb[13].mxu0  ;;  %v1988_v63 = vld [vmem:[%s2681_s12 + $0x18] sm:$0xff]  }
 0x8d9   : > { %v1136_v3 = vpop.f32.mrb[14].mxu0  ;;  %v1990_v2 = vld [vmem:[%s2681_s12 + $0x28] sm:$0xff]  }
 0x8da   : > { %v1849_v4 = vpop.f32.mrb[15].mxu0  ;;  %1853 = vmatmul.mubr.msk.bf16.vlgmr.msra.gmra.mrb[28].mxu1 %vm713_vm2, %v1139_v1  ;;  %v1989_v1 = vld [vmem:[%s2681_s12 + $0x20] sm:$0xff]   ;;  %v1991_v3 = vld [vmem:[%s2681_s12 + $0x30] sm:$0xff]  }
 0x8db   : > { %1864 = vmatprep.mubr.msk.bf16.mxu1 %vm2175_vm1, %v2174_v8  ;;  %v1992_v4 = vld [vmem:[%s2681_s12 + $0x38] sm:$0xff]  }
 0x8df   : > { %v1231_v5 = vpop.f32.mrb[16].mxu0 }
 0x8e0   : > { %v1237_v6 = vmul.f32 0.35355338, %v1231_v5  ;;  %v1860_v7 = vpop.f32.mrb[17].mxu0  ;;  %v1716_v5 = vld [vmem:[%s2680_s11] ss:$0 sm:$0xff] }
 0x8e1   : > { %v1234_v9 = vpop.f32.mrb[18].mxu0 }
 0x8e2   : > { %v1861_v10 = vpop.f32.mrb[19].mxu0  ;;  %v1238_v11 = vsel %vm713_vm2, %v1237_v6, -inf }
 0x8e3   : > { %1239 = vmax.xlane.f32.xlu0 %v1238_v11 }
 0x8f9   : > { %1250 = vrot.lane.b32.xlu0 %v2469_v36, %s2178_s14  ;;  %v1303_v36 = vsel %vm776_vm3, %v712_v19, 0 }
 0x8fa   : > { %1869 = vmatpush3.bf16.msra.mxu0 %v1303_v36 }
 0x8fb   : > { %1882 = vmatprep.subr.bf16.mxu0 %v2174_v8 }
 0x970   : > { %v1240_v12 = vpop.xlane.xlu0 %1239 }
 0x971   : > { %v1241_v13 = vsub.f32 %v1237_v6, %v1240_v12 }
 0x973   : > { %v1242_v14 = vmul.f32 1.442695, %v1241_v13 }
 0x974   : > { %v1251_v15 = vpop.permute.xlu0 %1250 }
 0x975   : > { %2007 = vpow2.f32 %v1242_v14  ;;  %v1256_v16 = vsel %vm776_vm3, %v1251_v15, 0 }
 0x976   : > { %1863 = vmatpush3.bf16.msra.mxu1 %v1256_v16 }
 0x977   : > { %1874 = vmatprep.subr.bf16.mxu1 %v2174_v8 }
 0x97f   : > { %v2008_v17 = vpop.eup %2007 }
 0x980   : > { %v1244_v18 = vsel %vm713_vm2, %v2008_v17, 0.0 }
 0x981   : > { %1245 = vadd.xlane.f32.xlu1 %v1244_v18 }
 0x9ad   : > { %v1180_v20 = vpop.f32.mrb[28].mxu1 }
 0x9ae   : > { %v1186_v21 = vadd.f32 %v1180_v20, %v2522_v39  ;;  %v1854_v22 = vpop.f32.mrb[29].mxu1  ;;  %v1720_v20 = vld [vmem:[%s2682_s13] ss:$0 sm:$0xff] }
 0x9af   : > { %v1183_v23 = vpop.f32.mrb[30].mxu1 }
 0x9b0   : > { %v1855_v24 = vpop.f32.mrb[31].mxu1 }
 0xa0e   : > { %v1246_v25 = vpop.xlane.xlu1 %1245 }
 0xa0f   : > { %2009 = vrcp.f32 %v1246_v25 }
 0xa19   : > { %v2010_v26 = vpop.eup %2009 }
 0xa1a   : > { %v1248_v27 = vmul.f32 %v2010_v26, %v2008_v17 }
 0xa1c   : > { %v1249_v28 = vpack.c.bf16 %v1248_v27, %v1248_v27 }
 0xa1e   : > { %1865 = vmatmul.mubr.msk.bf16.vlgmr.msra.gmra.mrb[32].mxu1 %vm713_vm2, %v1249_v28 }
 0xa1f   : > { %1878 = vmatprep.mubr.msk.bf16.mxu1 %vm2175_vm1, %v2174_v8  ;;  %1875 = vmatpush3.bf16.msra.mxu1 %v1983_v51 }
 0xa20   : > { %1876 = vmatprep.subr.bf16.mxu1 %v2174_v8 }
 0xaf1   : > { %v1292_v30 = vpop.f32.mrb[32].mxu1 }
 0xaf2   : > { %v1298_v31 = vpack.c.bf16 %v1292_v30, %v1292_v30  ;;  %v1866_v32 = vpop.f32.mrb[33].mxu1 }
 0xaf3   : > { %v1295_v33 = vpop.f32.mrb[34].mxu1 }
 0xaf4   : > { %v1867_v35 = vpop.f32.mrb[35].mxu1  ;;  %1871 = vmatmul.mubr.msk.bf16.vlgmr.msra.gmra.mrb[20].mxu0 %vm713_vm2, %v1298_v31 }
 0xaf5   : > { %1898 = vmatprep.mubr.msk.bf16.mxu0 %vm2175_vm1, %v2174_v8  ;;  %1883 = vmatpush3.bf16.msra.mxu0 %v1985_v52 }
 0xaf6   : > { %1884 = vmatprep.subr.bf16.mxu0 %v2174_v8 }
 0xaf9   : > { %1885 = vmatpush3.bf16.msra.mxu0 %v1986_v29 }
 0xafa   : > { %1886 = vmatprep.subr.bf16.mxu0 %v2174_v8 }
 0xafd   : > { %1887 = vmatpush3.bf16.msra.mxu0 %v1987_v62 }
 0xafe   : > { %1888 = vmatprep.subr.bf16.mxu0 %v2174_v8 }
 0xb01   : > { %1889 = vmatpush3.bf16.msra.mxu0 %v1988_v63 }
 0xb02   : > { %1890 = vmatprep.subr.bf16.mxu0 %v2174_v8 }
 0xb05   : > { %1891 = vmatpush3.bf16.msra.mxu0 %v1989_v1 }
 0xb06   : > { %1892 = vmatprep.subr.bf16.mxu0 %v2174_v8 }
 0xb09   : > { %1893 = vmatpush3.bf16.msra.mxu0 %v1990_v2 }
 0xb0a   : > { %1894 = vmatprep.subr.bf16.mxu0 %v2174_v8 }
 0xb0d   : > { %1895 = vmatpush3.bf16.msra.mxu0 %v1991_v3 }
 0xb0e   : > { %1896 = vmatprep.subr.bf16.mxu0 %v2174_v8 }
 0xb11   : > { %1897 = vmatpush3.bf16.msra.mxu0 %v1992_v4 }
 0xbc7   : > { %v1339_v37 = vpop.f32.mrb[20].mxu0 }
 0xbc8   : > { %v1345_v38 = vadd.f32 %v1339_v37, %v1186_v21  ;;  %v1872_v39 = vpop.f32.mrb[21].mxu0 }
 0xbc9   : > { %v1342_v41 = vpop.f32.mrb[22].mxu0 }
 0xbca   : > { %v1346_v42 = vadd.f32 %v1345_v38, %v2407_v0  ;;  %v1873_v43 = vpop.f32.mrb[23].mxu0  ;;  %v1984_v0 = vld [vmem:[%s2679_s10 + $0x8] sm:$0xff]  }
 0xbcb   : > { %1877 = vmatpush3.bf16.msra.mxu1 %v1984_v0 }
 0xbcc   : > { %v2569_v44 = vadd.f32 %v1713_v40, %v1346_v42 }
 0xbce   : > { %v1357_v45 = vsel %vm505_vm0, %v2569_v44, 0.0 }
 0xbcf   : > { %1358 = vadd.xlane.f32.xlu1 %v1357_v45 }
 0xc5c   : > { %v1359_v46 = vpop.xlane.xlu1 %1358 }
 0xc5d   : > { %v1360_v47 = vmul.f32 0.03125, %v1359_v46 }
 0xc5f   : > { %v1361_v48 = vsub.f32 %v2569_v44, %v1360_v47 }
 0xc61   : > { %v1362_v49 = vmul.f32 %v1361_v48, %v1361_v48 }
 0xc63   : > { %v1363_v50 = vsel %vm505_vm0, %v1362_v49, 0.0 }
 0xc64   : > { %1364 = vadd.xlane.f32.xlu1 %v1363_v50 }
 0xcf1   : > { %v1365_v53 = vpop.xlane.xlu1 %1364 }
 0xcf2   : > { %v1366_v54 = vmul.f32 0.03125, %v1365_v53 }
 0xcf4   : > { %v1367_v55 = vadd.f32 1e-06, %v1366_v54 }
 0xcf6   : > { %2011 = vrsqrt.f32 %v1367_v55 }
 0xd00   : > { %v2012_v56 = vpop.eup %2011 }
 0xd01   : > { %v1369_v57 = vmul.f32 %v2012_v56, %v1361_v48 }
 0xd03   : > { %v1376_v59 = vmul.f32 %v1714_v34, %v1369_v57 }
 0xd05   : > { %v1383_v60 = vadd.f32 %v1715_v58, %v1376_v59 }
 0xd07   : > { %v1384_v61 = vpack.c.bf16 %v1383_v60, %v1383_v60 }
 0xd09   : > { %1879 = vmatmul.mubr.msk.bf16.vlgmr.msra.gmra.mrb[36].mxu1 %vm505_vm0, %v1384_v61 }
 0xddc   : > { %v1445_v6 = vpop.f32.mrb[36].mxu1 }
 0xddd   : > { %v1446_v7 = vadd.f32 %v1716_v5, %v1445_v6  ;;  %v1880_v9 = vpop.f32.mrb[37].mxu1 }
 0xdde   : > { %v1448_v10 = vpop.f32.mrb[38].mxu1 }
 0xddf   : > { %v1452_v11 = vmul.f32 %v1446_v7, %v1446_v7  ;;  %v1881_v12 = vpop.f32.mrb[39].mxu1  ;;  %v1451_v8 = vmul.f32 0.5, %v1446_v7 }
 0xde1   : > { %v1453_v13 = vmul.f32 %v1452_v11, %v1446_v7 }
 0xde3   : > { %v1454_v14 = vmul.f32 0.044715, %v1453_v13 }
 0xde5   : > { %v1455_v15 = vadd.f32 %v1454_v14, %v1446_v7 }
 0xde7   : > { %v1456_v16 = vmul.f32 0.7978846, %v1455_v15 }
 0xde9   : > { %2013 = vtanh.f32 %v1456_v16 }
 0xdf3   : > { %v2014_v17 = vpop.eup %2013 }
 0xdf4   : > { %v1458_v18 = vadd.f32 1.0, %v2014_v17 }
 0xdf6   : > { %v1459_v19 = vmul.f32 %v1458_v18, %v1451_v8 }
 0xdf8   : > { %v1460_v36 = vpack.c.bf16 %v1459_v19, %v1459_v19 }
 0xdfa   : > { %1899 = vmatmul.mubr.bf16.vlgmr.msra.gmra.mrb[24].mxu0 %v1460_v36 }
 0xecd   : > { %v1566_v21 = vpop.f32.mrb[24].mxu0 }
 0xece   : > { %v1567_v22 = vadd.f32 %v1720_v20, %v1566_v21  ;;  %v1900_v23 = vpop.f32.mrb[25].mxu0 }
 0xecf   : > { %v1569_v24 = vpop.f32.mrb[26].mxu0 }
 0xed0   : > { %v1572_v25 = vadd.f32 %v1567_v22, %v2569_v44  ;;  %v1901_v26 = vpop.f32.mrb[27].mxu0 }
 0xed2   : > { %1573 = vst.msk [vmem:[%s496_s20] sm:$0xff] %vm505_vm0, %v1572_v25 }
 0xed3   : > { %2112 = shalt.err (!%p2109_p11)
}
 0xed4   : > { %s2113_s29 = scalar_lea.hbm %s2626_s16, 128  ;;  %s2117_s19 = scalar_lea.hbm %s2715_s24, 256 }
 0xed5   : > { %p2114_p13 = scmp.ne.s32.totalorder %s2626_s16, %s2113_s29  ;;  %p2118_p6 = scmp.lt.u32.totalorder %s2626_s16, %s2715_s24 }
 0xed6   : > { %p2119_p5 = scmp.lt.u32.totalorder %s2117_s19, %s2113_s29  ;;  %p2121_p12 = scmp.lt.u32.totalorder %s2113_s29, %s2626_s16 }
 0xed7   : > { %p2115_p0 = pnand %p2114_p13, %p2716_p10 }
 0xed8   : > { %p2120_p9 = por %p2119_p5, %p2118_p6 }
 0xed9   : > { %p2116_p1 = pneg %p2115_p0 }
 0xeda   : > { %p2122_p2 = por %p2121_p12, %p2120_p9 }
 0xedc   : > { %p2123_p3 = pnand %p2122_p2, %p2116_p1 }
 0xede   : > { %2126 = shalt.err (!%p2123_p3)
}
 0xedf   : > { %1914 = dma.vmem_to_hbm [thread:$0]  (%p2716_p10), %s2628_s22, 128, %s2626_s16, %s1575_s17  }
 0xee0 PF: > { %s2717_s25 = sld [smem:[#allocation14_spill]]  ;;  %s2718_s26 = sld [smem:[#allocation12_spill]] }
 0xee1   : > { %s2719_s21 = sld [smem:[#allocation18_spill]] }
 0xee6   : > { %p1936_p4 = scmp.ge.s32.totalorder %s2717_s25, 2  ;;  %s1600_s15 = sand.u32 1, %s2718_s26  }
 0xee7   : > { %p2720_p7 = scmp.ne.s32.totalorder %s2719_s21, 0  ;;  %s1601_s27 = scalar_lea.sflag [#allocation4], %s1600_s15 }
 0xee9   : > { %p1927_p8 = pnand %p1936_p4, %p2720_p7 }
 0xeeb   : > { %2152 = dma.done.wait (!%p1927_p8), %s1601_s27, 128  }
 0xeec   : > { %2154 = vsyncadd (!%p1927_p8), %s1601_s27, 4294967168  ;;  %s2721_s16 = sld [smem:[#allocation15_spill]]  ;;  %s2722_s18 = sld [smem:[#allocation13_spill]] }
 0xeed   : > { %s2723_s15 = sld [smem:[#allocation16_spill]]  ;;  %s2724_s29 = smov %s2161_s30 }
 0xef2   : > { %p26_p11 = scmp.ge.s32.totalorder %s2721_s16, 4   ;;  %s2725_s30 = smov %s2722_s18 }
 0xef4   :  { %28 = sbr.rel (!%p26_p11) target bundleno = 7 (0x7), region = 124 }
 0xefb   :  { %1606 = vsyncpa [#allocation3], 1 }
 0xefc   :  { %1608 = vsyncpa [#allocation3 + $0x1], 1 }
 0xefd   :  { %1609 = vsyncpa [#allocation6], 1 }
 0xefe   :  { %1610 = vsyncpa [#allocation4], 1 }
 0xeff   :  { %1612 = vsyncpa [#allocation4 + $0x1], 1 }

</bundles_post_ra>
